<compile_context>
chip_gen: v7x
topology: tpu7x:2x2x1
jax: 0.10.0
libtpu: 0.0.40
codegen_flags: <defaults>
</compile_context>

<pallas_src>
import jax
import jax.numpy as jnp
from jax.experimental import pallas as pl
from jax.experimental.pallas import tpu as pltpu

HIDDEN = 64          # logical hidden width (nn.Linear(..., 64))
HIDDEN_PAD = 128     # lane-padded hidden width (weights only; they stay resident in VMEM)
SUBLANE = 8          # f32 sublane granule for the streamed batch tiles


def _round_up(n, m):
    return ((n + m - 1) // m) * m


def qnet_kernel(x_ref, w1_ref, b1_ref, w2_ref, b2_ref, w3_ref, b3_ref, o_ref):
    # One batch tile per grid step; weights/biases are VMEM-resident (constant index_map).
    x = x_ref[...].astype(w1_ref.dtype)                 # f32 HBM read, cheap in-kernel bf16 cast
    h1 = jnp.dot(x, w1_ref[...], preferred_element_type=jnp.float32) + b1_ref[...]
    h1 = jnp.maximum(h1, 0.0)                           # f32 ReLU on the VPU
    h2 = jnp.dot(h1.astype(w2_ref.dtype), w2_ref[...],
                 preferred_element_type=jnp.float32) + b2_ref[...]
    h2 = jnp.maximum(h2, 0.0)
    out = jnp.dot(h2.astype(w3_ref.dtype), w3_ref[...],
                  preferred_element_type=jnp.float32) + b3_ref[...]
    o_ref[...] = out.astype(o_ref.dtype)


def prepare_params(params, compute_dtype=jnp.bfloat16):
    """One-time prep: cast weights to bf16 and zero-pad the hidden dims to 128 lanes.

    Zero padding is exact: padded bias lanes stay 0, ReLU(0) = 0, and the padded rows of
    w2/w3 are 0, so padded lanes never leak into real outputs.  The x-facing K dim of w1
    and the output-facing N dim of w3 stay unpadded (the streamed tensors are unpadded).
    """
    def pad2(a, rows, cols, dtype):
        a = jnp.asarray(a, dtype)
        if a.ndim == 1:
            a = a[None, :]
        return jnp.pad(a, ((0, rows - a.shape[0]), (0, cols - a.shape[1])))

    input_dim = params["w1"].shape[0]
    out_dim = params["w3"].shape[1]
    return {
        "input_dim": input_dim,
        "out_dim": out_dim,
        "w1": pad2(params["w1"], input_dim, HIDDEN_PAD, compute_dtype),
        "b1": pad2(params["b1"], 1, HIDDEN_PAD, jnp.float32),
        "w2": pad2(params["w2"], HIDDEN_PAD, HIDDEN_PAD, compute_dtype),
        "b2": pad2(params["b2"], 1, HIDDEN_PAD, jnp.float32),
        "w3": pad2(params["w3"], HIDDEN_PAD, out_dim, compute_dtype),
        "b3": pad2(params["b3"], 1, out_dim, jnp.float32),
    }


def qnetwork_forward(x, prep, *, tb=1024, out_dtype=jnp.float32):
    """x: (B, input_dim) float32.  prep: output of prepare_params()."""
    B, input_dim = x.shape
    assert input_dim == prep["input_dim"]
    out_dim = prep["out_dim"]

    # Batch tile: multiple of the f32 sublane granule, large to amortize the ~0.35us
    # per-grid-step overhead, but capped so the grid has >= 2 steps when B allows
    # (so v7x's two TensorCores both get work on the "parallel" batch axis).
    if B <= SUBLANE:
        tb = B                                   # single block == full array (always legal)
    else:
        half = _round_up(pl.cdiv(B, 2), SUBLANE)
        tb = max(SUBLANE, min(_round_up(tb, SUBLANE), half))
    grid = (pl.cdiv(B, tb),)

    def const(shape):  # weights/biases: same block every grid step -> fetched once, stays in VMEM
        return pl.BlockSpec(shape, lambda i: (0, 0))

    out = pl.pallas_call(
        qnet_kernel,
        out_shape=jax.ShapeDtypeStruct((B, out_dim), out_dtype),
        grid=grid,
        in_specs=[
            pl.BlockSpec((tb, input_dim), lambda i: (i, 0)),   # x: streamed, unpadded minor dim
            const((input_dim, HIDDEN_PAD)),
            const((1, HIDDEN_PAD)),
            const((HIDDEN_PAD, HIDDEN_PAD)),
            const((1, HIDDEN_PAD)),
            const((HIDDEN_PAD, out_dim)),
            const((1, out_dim)),
        ],
        out_specs=pl.BlockSpec((tb, out_dim), lambda i: (i, 0)),  # unpadded, no trailing slice
        compiler_params=pltpu.CompilerParams(
            dimension_semantics=("parallel",),   # batch tiles independent (v7x megacore split)
        ),
    )(x, prep["w1"], prep["b1"], prep["w2"], prep["b2"], prep["w3"], prep["b3"])
    return out


def init_params(key, input_dim, output_dim):
    """Deterministic init mimicking nn.Linear default (uniform +/- 1/sqrt(fan_in))."""
    def linear(k, fan_in, fan_out):
        kw, kb = jax.random.split(k)
        bound = 1.0 / jnp.sqrt(float(fan_in))
        w = jax.random.uniform(kw, (fan_in, fan_out), jnp.float32, -bound, bound)
        b = jax.random.uniform(kb, (fan_out,), jnp.float32, -bound, bound)
        return w, b

    k1, k2, k3 = jax.random.split(key, 3)
    w1, b1 = linear(k1, input_dim, HIDDEN)
    w2, b2 = linear(k2, HIDDEN, HIDDEN)
    w3, b3 = linear(k3, HIDDEN, output_dim)
    return {"w1": w1, "b1": b1, "w2": w2, "b2": b2, "w3": w3, "b3": b3}


def reference_forward(x, p, compute_dtype=jnp.bfloat16):
    # Mirrors the kernel's numerics: bf16 matmul inputs, f32 accumulation/bias/ReLU.
    def mm(a, w):
        return jnp.dot(a.astype(compute_dtype), w.astype(compute_dtype),
                       preferred_element_type=jnp.float32)
    h1 = jnp.maximum(mm(x, p["w1"]) + p["b1"], 0.0)
    h2 = jnp.maximum(mm(h1, p["w2"]) + p["b2"], 0.0)
    return mm(h2, p["w3"]) + p["b3"]


if __name__ == "__main__":
    key = jax.random.PRNGKey(0)
    k_param, k_x1, k_x2 = jax.random.split(key, 3)

    input_dim = 8     # small state vector
    output_dim = 4    # small discrete action space

    params = init_params(k_param, input_dim, output_dim)
    prep = prepare_params(params)             # one-time weight padding / bf16 cast (hoisted)

    # RL-style tiny batch (the common predict() path): single full-array block.
    x_small = jax.random.normal(k_x1, (2, input_dim), jnp.float32)
    out_small = jax.block_until_ready(qnetwork_forward(x_small, prep))
    ref_small = reference_forward(x_small, params)
    assert out_small.shape == (2, output_dim)
    assert jnp.allclose(out_small, ref_small, atol=1e-3, rtol=1e-3), \
        f"max abs err {jnp.max(jnp.abs(out_small - ref_small))}"

    # Larger batch exercising the streamed multi-step grid (2 tiles of 32 rows).
    x_big = jax.random.normal(k_x2, (64, input_dim), jnp.float32)
    out_big = jax.block_until_ready(qnetwork_forward(x_big, prep))
    ref_big = reference_forward(x_big, params)
    assert out_big.shape == (64, output_dim)
    assert jnp.allclose(out_big, ref_big, atol=1e-3, rtol=1e-3), \
        f"max abs err {jnp.max(jnp.abs(out_big - ref_big))}"

    print("KERNEL_OK")
</pallas_src>

<mosaic_0001>
module attributes {stable_mosaic.version = 11 : i64} {
  func.func @qnet_kernel(%arg0: i32, %arg1: memref<2x8xf32, #tpu.memory_space<vmem>>, %arg2: memref<8x128xbf16, #tpu.memory_space<vmem>>, %arg3: memref<1x128xf32, #tpu.memory_space<vmem>>, %arg4: memref<128x128xbf16, #tpu.memory_space<vmem>>, %arg5: memref<1x128xf32, #tpu.memory_space<vmem>>, %arg6: memref<128x4xbf16, #tpu.memory_space<vmem>>, %arg7: memref<1x4xf32, #tpu.memory_space<vmem>>, %arg8: memref<2x4xf32, #tpu.memory_space<vmem>>) attributes {dimension_semantics = [#tpu.dimension_semantics<parallel>], iteration_bounds = array<i64: 1>, scalar_prefetch = 0 : i64, scratch_operands = 0 : i64, tpu.core_type = #tpu.core_type<tc>, window_params = [{transform_indices = @transform_0, window_bounds = array<i64: 2, 8>}, {pipeline_mode = #tpu.pipeline_mode<synchronous>, transform_indices = @transform_1, window_bounds = array<i64: 8, 128>}, {pipeline_mode = #tpu.pipeline_mode<synchronous>, transform_indices = @transform_2, window_bounds = array<i64: 1, 128>}, {pipeline_mode = #tpu.pipeline_mode<synchronous>, transform_indices = @transform_3, window_bounds = array<i64: 128, 128>}, {pipeline_mode = #tpu.pipeline_mode<synchronous>, transform_indices = @transform_4, window_bounds = array<i64: 1, 128>}, {pipeline_mode = #tpu.pipeline_mode<synchronous>, transform_indices = @transform_5, window_bounds = array<i64: 128, 4>}, {pipeline_mode = #tpu.pipeline_mode<synchronous>, transform_indices = @transform_6, window_bounds = array<i64: 1, 4>}, {transform_indices = @transform_7, window_bounds = array<i64: 2, 4>}]} {
    %c0 = arith.constant 0 : index
    %c0_0 = arith.constant 0 : index
    %0 = vector.load %arg1[%c0, %c0_0] : memref<2x8xf32, #tpu.memory_space<vmem>>, vector<2x8xf32>
    %1 = arith.truncf %0 : vector<2x8xf32> to vector<2x8xbf16>
    %c0_1 = arith.constant 0 : index
    %c0_2 = arith.constant 0 : index
    %2 = vector.load %arg2[%c0_1, %c0_2] : memref<8x128xbf16, #tpu.memory_space<vmem>>, vector<8x128xbf16>
    %cst = arith.constant dense<0.000000e+00> : vector<2x128xf32>
    %3 = tpu.matmul %1, %2, %cst {dimension_numbers = #tpu.dot_dimension_numbers<[1], [0], [0], [1], [0, 0, 1, 1], [], []>} : vector<2x8xbf16>, vector<8x128xbf16>, vector<2x128xf32> -> vector<2x128xf32>
    %c0_3 = arith.constant 0 : index
    %c0_4 = arith.constant 0 : index
    %4 = vector.load %arg3[%c0_3, %c0_4] : memref<1x128xf32, #tpu.memory_space<vmem>>, vector<1x128xf32>
    %5 = vector.broadcast %4 : vector<1x128xf32> to vector<2x128xf32>
    %6 = arith.addf %3, %5 : vector<2x128xf32>
    %cst_5 = arith.constant 0.000000e+00 : f32
    %7 = vector.broadcast %cst_5 : f32 to vector<2x128xf32>
    %8 = arith.maximumf %6, %7 : vector<2x128xf32>
    %9 = arith.truncf %8 : vector<2x128xf32> to vector<2x128xbf16>
    %c0_6 = arith.constant 0 : index
    %c0_7 = arith.constant 0 : index
    %10 = vector.load %arg4[%c0_6, %c0_7] : memref<128x128xbf16, #tpu.memory_space<vmem>>, vector<128x128xbf16>
    %cst_8 = arith.constant dense<0.000000e+00> : vector<2x128xf32>
    %11 = tpu.matmul %9, %10, %cst_8 {dimension_numbers = #tpu.dot_dimension_numbers<[1], [0], [0], [1], [0, 0, 1, 1], [], []>} : vector<2x128xbf16>, vector<128x128xbf16>, vector<2x128xf32> -> vector<2x128xf32>
    %c0_9 = arith.constant 0 : index
    %c0_10 = arith.constant 0 : index
    %12 = vector.load %arg5[%c0_9, %c0_10] : memref<1x128xf32, #tpu.memory_space<vmem>>, vector<1x128xf32>
    %13 = vector.broadcast %12 : vector<1x128xf32> to vector<2x128xf32>
    %14 = arith.addf %11, %13 : vector<2x128xf32>
    %cst_11 = arith.constant 0.000000e+00 : f32
    %15 = vector.broadcast %cst_11 : f32 to vector<2x128xf32>
    %16 = arith.maximumf %14, %15 : vector<2x128xf32>
    %17 = arith.truncf %16 : vector<2x128xf32> to vector<2x128xbf16>
    %c0_12 = arith.constant 0 : index
    %c0_13 = arith.constant 0 : index
    %18 = vector.load %arg6[%c0_12, %c0_13] : memref<128x4xbf16, #tpu.memory_space<vmem>>, vector<128x4xbf16>
    %cst_14 = arith.constant dense<0.000000e+00> : vector<2x4xf32>
    %19 = tpu.matmul %17, %18, %cst_14 {dimension_numbers = #tpu.dot_dimension_numbers<[1], [0], [0], [1], [0, 0, 1, 1], [], []>} : vector<2x128xbf16>, vector<128x4xbf16>, vector<2x4xf32> -> vector<2x4xf32>
    %c0_15 = arith.constant 0 : index
    %c0_16 = arith.constant 0 : index
    %20 = vector.load %arg7[%c0_15, %c0_16] : memref<1x4xf32, #tpu.memory_space<vmem>>, vector<1x4xf32>
    %21 = vector.broadcast %20 : vector<1x4xf32> to vector<2x4xf32>
    %22 = arith.addf %19, %21 : vector<2x4xf32>
    %c0_17 = arith.constant 0 : index
    %c0_18 = arith.constant 0 : index
    %23 = vector.load %arg8[%c0_17, %c0_18] : memref<2x4xf32, #tpu.memory_space<vmem>>, vector<2x4xf32>
    tpu.vector_store %arg8[%c0_17, %c0_18], %22 {strides = array<i32>} : memref<2x4xf32, #tpu.memory_space<vmem>>, vector<2x4xf32>,
    return
  }
  func.func @transform_0(%arg0: i32) -> (i32, i32) {
    %c0_i32 = arith.constant 0 : i32
    %c0_i32_0 = arith.constant 0 : i32
    return %arg0, %c0_i32 : i32, i32
  }
  func.func @transform_1(%arg0: i32) -> (i32, i32) {
    %c0_i32 = arith.constant 0 : i32
    %c0_i32_0 = arith.constant 0 : i32
    %c0_i32_1 = arith.constant 0 : i32
    return %c0_i32, %c0_i32_0 : i32, i32
  }
  func.func @transform_2(%arg0: i32) -> (i32, i32) {
    %c0_i32 = arith.constant 0 : i32
    %c0_i32_0 = arith.constant 0 : i32
    %c0_i32_1 = arith.constant 0 : i32
    return %c0_i32, %c0_i32_0 : i32, i32
  }
  func.func @transform_3(%arg0: i32) -> (i32, i32) {
    %c0_i32 = arith.constant 0 : i32
    %c0_i32_0 = arith.constant 0 : i32
    %c0_i32_1 = arith.constant 0 : i32
    return %c0_i32, %c0_i32_0 : i32, i32
  }
  func.func @transform_4(%arg0: i32) -> (i32, i32) {
    %c0_i32 = arith.constant 0 : i32
    %c0_i32_0 = arith.constant 0 : i32
    %c0_i32_1 = arith.constant 0 : i32
    return %c0_i32, %c0_i32_0 : i32, i32
  }
  func.func @transform_5(%arg0: i32) -> (i32, i32) {
    %c0_i32 = arith.constant 0 : i32
    %c0_i32_0 = arith.constant 0 : i32
    %c0_i32_1 = arith.constant 0 : i32
    return %c0_i32, %c0_i32_0 : i32, i32
  }
  func.func @transform_6(%arg0: i32) -> (i32, i32) {
    %c0_i32 = arith.constant 0 : i32
    %c0_i32_0 = arith.constant 0 : i32
    %c0_i32_1 = arith.constant 0 : i32
    return %c0_i32, %c0_i32_0 : i32, i32
  }
  func.func @transform_7(%arg0: i32) -> (i32, i32) {
    %c0_i32 = arith.constant 0 : i32
    %c0_i32_0 = arith.constant 0 : i32
    return %arg0, %c0_i32 : i32, i32
  }
}

</mosaic_0001>

<bundles_post_ra>
// kernel: tpu_custom_call.1
= control target key start
LH: loop header
LB: loop body
LE: loop exit
PB: predicated region body
PF: predicated region fallthrough
CT: control target
= control target key end

     0   :  { %vm42_vm0 = vcmask 1043456   ;;  %vm38_vm1 = vcmask 64512   ;;  %v457_v1 = vmov 0.0   ;;  %vm458_vm2 = vmmov 0   ;;  %s596_s0 = inlined_call_operand.vmem [shape: f32[2,8], index: 0, kind: input, shape index: {}]   ;;  %s597_s1 = inlined_call_operand.vmem [shape: bf16[8,128], index: 1, kind: input, shape index: {}]   ;;  %s598_s2 = inlined_call_operand.vmem [shape: f32[1,128], index: 2, kind: input, shape index: {}]   ;;  %s599_s3 = inlined_call_operand.vmem [shape: bf16[128,128], index: 3, kind: input, shape index: {}]   ;;  %s600_s4 = inlined_call_operand.vmem [shape: f32[1,128], index: 4, kind: input, shape index: {}]   ;;  %s601_s5 = inlined_call_operand.vmem [shape: bf16[128,4], index: 5, kind: input, shape index: {}]   ;;  %s602_s6 = inlined_call_operand.vmem [shape: f32[1,4], index: 6, kind: input, shape index: {}]   ;;  %s603_s7 = inlined_call_operand.hbm [shape: f32[2,4], index: 7, kind: output, shape index: {}]  }
   0x1   :  { %v30_v0 = vld [vmem:[%s597_s1] sm:$0xf]  ;;  %368 = vmatprep.subr.bf16.mxu0 %v457_v1  ;;  %370 = vmatprep.mubr.msk.bf16.mxu0 %vm458_vm2, %v457_v1  ;;  %v418_v6 = vld [vmem:[%s599_s3 + $0x8] sm:$0xff]   ;;  %v419_v7 = vld [vmem:[%s599_s3 + $0x10] sm:$0xff]  }
   0x2   :  { %v44_v2 = vsel %vm42_vm0, %v30_v0, 0  ;;  %v28_v3 = vld [vmem:[%s596_s0] sm:$0x3]  ;;  %374 = vmatprep.subr.bf16.mxu1 %v457_v1  ;;  %390 = vmatprep.mubr.msk.bf16.mxu1 %vm458_vm2, %v457_v1  ;;  %v420_v8 = vld [vmem:[%s599_s3 + $0x18] sm:$0xff]  }
   0x3   :  { %v417_v4 = vld [vmem:[%s599_s3] sm:$0xff]   ;;  %369 = vmatpush3.bf16.msra.mxu0 %v44_v2  ;;  %v29_v5 = vpack.c.bf16 %v28_v3, %v28_v3 }
   0x4   :  { %375 = vmatpush3.bf16.msra.mxu1 %v417_v4  ;;  %394 = vmatprep.subr.bf16.mxu0 %v457_v1 }
   0x5   :  { %376 = vmatprep.subr.bf16.mxu1 %v457_v1 }
   0x6   :  { %371 = vmatmul.mubr.msk.bf16.vlgmr.msra.gmra.mrb[0].mxu0 %vm38_vm1, %v29_v5 }
   0x7   :  { %410 = vmatprep.mubr.msk.bf16.mxu0 %vm458_vm2, %v457_v1 }
   0x8   :  { %377 = vmatpush3.bf16.msra.mxu1 %v418_v6 }
   0x9   :  { %378 = vmatprep.subr.bf16.mxu1 %v457_v1 }
   0xc   :  { %379 = vmatpush3.bf16.msra.mxu1 %v419_v7 }
   0xd   :  { %380 = vmatprep.subr.bf16.mxu1 %v457_v1 }
   0xe   :  { %12 = vsyncpa [#allocation3], 0  ;;  %v421_v9 = vld [vmem:[%s599_s3 + $0x20] sm:$0xff]   ;;  %v422_v10 = vld [vmem:[%s599_s3 + $0x28] sm:$0xff]   ;;  %s459_s14 = smov [#allocation2]   ;;  %vm312_vm3 = vcmask 25600  }
   0xf   :  { %v423_v11 = vld [vmem:[%s599_s3 + $0x30] sm:$0xff]   ;;  %v424_v12 = vld [vmem:[%s599_s3 + $0x38] sm:$0xff]   ;;  %v425_v13 = vld [vmem:[%s601_s5] sm:$0xff]   ;;  %s320_s15 = sshll.u32 %s459_s14, 4  ;;  %s321_s15 = int_to_ptr.vmem [resolvable:$true] %s320_s15 }
  0x10   :  { %381 = vmatpush3.bf16.msra.mxu1 %v420_v8  ;;  %395 = vmatpush3.bf16.msra.mxu0 %v425_v13  ;;  %v426_v14 = vld [vmem:[%s601_s5 + $0x8] sm:$0xff]   ;;  %v427_v15 = vld [vmem:[%s601_s5 + $0x10] sm:$0xff]   ;;  %v428_v16 = vld [vmem:[%s601_s5 + $0x18] sm:$0xff]   ;;  %p438_p1 = scmp.lt.s32.totalorder %s321_s15, %s321_s15 }
  0x11   :  { %382 = vmatprep.subr.bf16.mxu1 %v457_v1  ;;  %396 = vmatprep.subr.bf16.mxu0 %v457_v1  ;;  %v429_v17 = vld [vmem:[%s601_s5 + $0x20] sm:$0xff]   ;;  %v430_v18 = vld [vmem:[%s601_s5 + $0x28] sm:$0xff]   ;;  %v431_v27 = vld [vmem:[%s601_s5 + $0x30] sm:$0xff]  }
  0x12   :  { %v328_v19 = vld [vmem:[%s598_s2] ss:$0 sm:$0xff]  ;;  %v432_v28 = vld [vmem:[%s601_s5 + $0x38] sm:$0xff]  }
  0x13   :  { %v330_v29 = vld [vmem:[%s600_s4] ss:$0 sm:$0xff]  ;;  %s433_s4 = scalar_lea.vmem %s321_s15, 32 }
  0x14   :  { %383 = vmatpush3.bf16.msra.mxu1 %v421_v9  ;;  %397 = vmatpush3.bf16.msra.mxu0 %v426_v14  ;;  %v339_v37 = vld [vmem:[%s602_s6] ss:$0 sm:$0xff]  ;;  %p434_p0 = scmp.ne.s32.totalorder %s321_s15, %s433_s4  ;;  %p439_p2 = scmp.lt.s32.totalorder %s433_s4, %s433_s4 }
  0x15   :  { %384 = vmatprep.subr.bf16.mxu1 %v457_v1  ;;  %398 = vmatprep.subr.bf16.mxu0 %v457_v1 }
  0x16   :  { %p440_p3 = por %p439_p2, %p438_p1 }
  0x18   :  { %385 = vmatpush3.bf16.msra.mxu1 %v422_v10  ;;  %399 = vmatpush3.bf16.msra.mxu0 %v427_v15  ;;  %p441_p4 = pnand %p440_p3, %p434_p0 }
  0x19   :  { %386 = vmatprep.subr.bf16.mxu1 %v457_v1  ;;  %400 = vmatprep.subr.bf16.mxu0 %v457_v1 }
  0x1c   :  { %387 = vmatpush3.bf16.msra.mxu1 %v423_v11  ;;  %401 = vmatpush3.bf16.msra.mxu0 %v428_v16 }
  0x1d   :  { %388 = vmatprep.subr.bf16.mxu1 %v457_v1  ;;  %402 = vmatprep.subr.bf16.mxu0 %v457_v1 }
  0x20   :  { %389 = vmatpush3.bf16.msra.mxu1 %v424_v12  ;;  %403 = vmatpush3.bf16.msra.mxu0 %v429_v17 }
  0x21   :  { %404 = vmatprep.subr.bf16.mxu0 %v457_v1 }
  0x24   :  { %405 = vmatpush3.bf16.msra.mxu0 %v430_v18 }
  0x25   :  { %406 = vmatprep.subr.bf16.mxu0 %v457_v1 }
  0x28   :  { %407 = vmatpush3.bf16.msra.mxu0 %v431_v27 }
  0x29   :  { %408 = vmatprep.subr.bf16.mxu0 %v457_v1 }
  0x2c   :  { %409 = vmatpush3.bf16.msra.mxu0 %v432_v28 }
  0xd9   :  { %v80_v20 = vpop.f32.mrb[0].mxu0 }
  0xda   :  { %v81_v21 = vadd.f32 %v328_v19, %v80_v20  ;;  %v372_v22 = vpop.f32.mrb[1].mxu0 }
  0xdb   :  { %v83_v23 = vpop.f32.mrb[2].mxu0 }
  0xdc   :  { %v86_v24 = vmax.f32 %v81_v21, 0.0  ;;  %v373_v25 = vpop.f32.mrb[3].mxu0 }
  0xde   :  { %v87_v26 = vpack.c.bf16 %v86_v24, %v86_v24 }
  0xe0   :  { %391 = vmatmul.mubr.bf16.vlgmr.msra.gmra.mrb[0].mxu1 %v87_v26 }
 0x1b3   :  { %v193_v30 = vpop.f32.mrb[0].mxu1 }
 0x1b4   :  { %v194_v31 = vadd.f32 %v330_v29, %v193_v30  ;;  %v392_v32 = vpop.f32.mrb[1].mxu1 }
 0x1b5   :  { %v196_v33 = vpop.f32.mrb[2].mxu1 }
 0x1b6   :  { %v199_v34 = vmax.f32 %v194_v31, 0.0  ;;  %v393_v35 = vpop.f32.mrb[3].mxu1 }
 0x1b8   :  { %v200_v36 = vpack.c.bf16 %v199_v34, %v199_v34 }
 0x1ba   :  { %411 = vmatmul.mubr.bf16.vlgmr.msra.gmra.mrb[4].mxu0 %v200_v36 }
 0x28d   :  { %v306_v38 = vpop.f32.mrb[4].mxu0 }
 0x28e   :  { %v307_v39 = vadd.f32 %v339_v37, %v306_v38  ;;  %v412_v40 = vpop.f32.mrb[5].mxu0 }
 0x28f   :  { %v309_v41 = vpop.f32.mrb[6].mxu0 }
 0x290   :  { %v413_v42 = vpop.f32.mrb[7].mxu0  ;;  %313 = vst.msk [vmem:[#allocation2] sm:$0x3] %vm312_vm3, %v307_v39 }
 0x291   :  { %444 = shalt.err (!%p441_p4)
}
 0x292   :  { %s445_s6 = scalar_lea.hbm %s603_s7, 32 }
 0x293   :  { %p446_p5 = scmp.ne.s32.totalorder %s603_s7, %s445_s6  ;;  %p449_p6 = scmp.lt.u32.totalorder %s445_s6, %s603_s7 }
 0x295   :  { %p451_p7 = pnand %p449_p6, %p446_p5 }
 0x297   :  { %454 = shalt.err (!%p451_p7)
}
 0x298   :  { %323 = dma.vmem_to_hbm [thread:$0]  %s321_s15, 32, %s603_s7, [#allocation3]  }
 0x299   :  { %455 = dma.done.wait [#allocation3], 32  }
 0x29a   :  { %456 = vsyncadd [#allocation3], 4294967264 }
 0x29b   :  { %327 = vsyncpa [#allocation3], 1 }

</bundles_post_ra>
